<compile_context>
chip_gen: v7x
topology: tpu7x:2x2x1
jax: 0.10.0
libtpu: 0.0.40
codegen_flags: <defaults>
</compile_context>

<pallas_src>
import functools

import jax
import jax.numpy as jnp
from jax.experimental import pallas as pl
from jax.experimental.pallas import tpu as pltpu


def _round_up(x, m):
    return ((x + m - 1) // m) * m


def _patchify_kernel(t_ref, w_ref, b_ref, o_ref, *, cout, eps, padded):
    """One grid step = one row tile of patch tokens.

    t_ref : (tR, K)  patch-flattened tokens (rows = batch * grid positions),
                     bf16 (or f32) -- fed straight to the MXU.
    w_ref : (K, D)   1x1-conv weight, transposed (D = Cout, optionally padded).
    b_ref : (1, D)   conv bias, f32.
    o_ref : (tR, D)  LayerNorm'd output tokens.
    """
    # 1x1 conv == dense layer over K = Cin*p*p. bf16 MXU matmul, f32 accumulate.
    y = jnp.dot(t_ref[...], w_ref[...], preferred_element_type=jnp.float32)
    y = y + b_ref[...]                                   # (tR, D), f32

    # LayerNorm over the true Cout channels (eps=1e-6, no affine). All f32.
    inv_c = jnp.float32(1.0 / cout)
    mean = jnp.sum(y, axis=-1, keepdims=True) * inv_c
    centered = y - mean
    if padded:
        # Padded lanes of y are exactly zero (zero weight cols / zero bias),
        # so sum(y*y) over the full lane width equals the sum over real
        # channels: no lane mask needed.
        var = jnp.maximum(
            jnp.sum(y * y, axis=-1, keepdims=True) * inv_c - mean * mean, 0.0)
    else:
        var = jnp.sum(centered * centered, axis=-1, keepdims=True) * inv_c
    o_ref[...] = (centered * jax.lax.rsqrt(var + eps)).astype(o_ref.dtype)


def patchify_ps_forward(x, conv_w, conv_b, patch_size, flatten=False, *,
                        eps=1e-6, compute_dtype=jnp.bfloat16, out_dtype=None,
                        row_tile=None, vmem_budget_bytes=20 * 1024 * 1024):
    """PatchifyPS forward.

    x      : (N, Cin, H, W)
    conv_w : (Cout, Cin*p*p)  -- the 1x1 Conv2d weight (kernel dims squeezed)
    conv_b : (Cout,)
    returns (N, Cout, H/p, W/p), or (N, (H/p)*(W/p), Cout) if flatten.
    """
    N, Cin, H, W = x.shape
    p = int(patch_size)
    assert H % p == 0 and W % p == 0
    Hp, Wp = H // p, W // p
    K = Cin * p * p
    Cout = conv_w.shape[0]
    assert conv_w.shape == (Cout, K)
    assert conv_b.shape == (Cout,)

    compute_dtype = jnp.dtype(compute_dtype) if compute_dtype is not None else x.dtype
    out_dtype = jnp.dtype(out_dtype) if out_dtype is not None else x.dtype

    # --- patchify layout glue: single XLA transpose pass, fused with the bf16
    #     cast (so the tokens hit HBM at half width). K-index ordering is
    #     c*p*p + i*p + j, matching nn.PixelUnshuffle.
    # TODO(synk): fold this reorder into the kernel so the activation crosses
    # HBM exactly once.
    rows = N * Hp * Wp
    tokens = (x.reshape(N, Cin, Hp, p, Wp, p)
               .transpose(0, 2, 4, 1, 3, 5)
               .reshape(rows, K)
               .astype(compute_dtype))

    # --- conditional lane padding of Cout: pad to a multiple of 128 only when
    #     the overhead is small; for small Cout keep masked stores (cheaper
    #     than 4x output bytes plus a slice pass).
    d_pad = _round_up(Cout, 128)
    padded = (d_pad != Cout) and ((d_pad - Cout) * 4 <= Cout)
    d = d_pad if padded else Cout
    if padded:
        w_t = (jnp.zeros((K, d), compute_dtype)
               .at[:, :Cout].set(conv_w.T.astype(compute_dtype)))
        b2 = (jnp.zeros((1, d), jnp.float32)
              .at[0, :Cout].set(conv_b.astype(jnp.float32)))
    else:
        w_t = conv_w.T.astype(compute_dtype)
        b2 = conv_b.astype(jnp.float32).reshape(1, Cout)

    # --- row tile sizing against a v7x-safe VMEM budget (64 MiB physical).
    bc = compute_dtype.itemsize
    bo = out_dtype.itemsize
    resident = K * d * bc + d * 4                 # weight (single-buffered) + bias
    per_row = 2 * (K * bc + d * bo)               # double-buffered token + out tiles
    cap = 1024 if row_tile is None else max(8, (int(row_tile) // 8) * 8)
    t_r = max(8, min(cap, ((vmem_budget_bytes - resident) // per_row // 8) * 8))
    t_r = min(t_r, _round_up(rows, 8))
    if rows >= 16:
        # Ensure >= 2 grid steps so v7x megacore can shard row tiles.
        t_r = min(t_r, _round_up((rows + 1) // 2, 8))
    rows_pad = _round_up(rows, t_r)
    if rows_pad != rows:
        tokens = jnp.pad(tokens, ((0, rows_pad - rows), (0, 0)))

    vmem_limit = int(min(48 * 1024 * 1024,
                         max(16 * 1024 * 1024, 2 * (t_r * per_row + resident))))

    kernel = functools.partial(_patchify_kernel, cout=Cout, eps=eps, padded=padded)

    def build(resident_mode):
        kw = {} if resident_mode is None else dict(pipeline_mode=resident_mode)
        return pl.pallas_call(
            kernel,
            out_shape=jax.ShapeDtypeStruct((rows_pad, d), out_dtype),
            grid_spec=pltpu.PrefetchScalarGridSpec(
                num_scalar_prefetch=0,
                grid=(rows_pad // t_r,),
                in_specs=[
                    pl.BlockSpec((t_r, K), lambda r: (r, 0)),        # tokens
                    pl.BlockSpec((K, d), lambda r: (0, 0), **kw),    # weight (resident)
                    pl.BlockSpec((1, d), lambda r: (0, 0), **kw),    # bias   (resident)
                ],
                out_specs=pl.BlockSpec((t_r, d), lambda r: (r, 0)),
            ),
            compiler_params=pltpu.CompilerParams(
                dimension_semantics=("parallel",),
                vmem_limit_bytes=vmem_limit),
        )

    try:
        # Single-buffer the resident weight/bias (constant index_map => never
        # re-fetched) to free VMEM for bigger row tiles.
        out_tokens = build(pl.Buffered(1))(tokens, w_t, b2)
    except Exception:
        # Fallback if this jax build rejects pipeline_mode / Buffered(1).
        out_tokens = build(None)(tokens, w_t, b2)

    if rows_pad != rows:
        out_tokens = out_tokens[:rows]
    if padded:
        out_tokens = out_tokens[:, :Cout]
    if flatten:
        return out_tokens.reshape(N, Hp * Wp, Cout)
    # TODO(synk): emit channel-major output from the kernel (in-tile XLU
    # transpose) to save this XLA NHWC->NCHW pass for flatten=False.
    return out_tokens.reshape(N, Hp, Wp, Cout).transpose(0, 3, 1, 2)


def _reference_forward(x, conv_w, conv_b, patch_size, flatten=False, eps=1e-6):
    """Pure-JAX reference matching the PyTorch module (all f32)."""
    N, C, H, W = x.shape
    p = patch_size
    Hp, Wp = H // p, W // p
    # nn.PixelUnshuffle(p): out[n, c*p*p + i*p + j, h, w] = x[n, c, h*p+i, w*p+j]
    t = (x.reshape(N, C, Hp, p, Wp, p)
          .transpose(0, 1, 3, 5, 2, 4)
          .reshape(N, C * p * p, Hp, Wp))
    # 1x1 Conv2d
    y = jnp.einsum('nkhw,ok->nohw', t, conv_w) + conv_b[None, :, None, None]
    # LayerNorm2d (over channels, no affine)
    yp = y.transpose(0, 2, 3, 1)
    mean = yp.mean(-1, keepdims=True)
    var = jnp.mean(jnp.square(yp - mean), -1, keepdims=True)
    yn = (yp - mean) / jnp.sqrt(var + eps)
    out = yn.transpose(0, 3, 1, 2)
    if flatten:
        out = out.transpose(0, 2, 3, 1).reshape(N, Hp * Wp, -1)
    return out


if __name__ == "__main__":
    # Small config: img_size=16, patch_size=2, in_channels=4, out_channels=32.
    N, Cin, H, W = 2, 4, 16, 16
    patch_size, Cout = 2, 32
    K = Cin * patch_size * patch_size

    key = jax.random.PRNGKey(0)
    kx, kw, kb = jax.random.split(key, 3)
    x = jax.random.normal(kx, (N, Cin, H, W), dtype=jnp.float32)
    # 1x1 conv weight/bias (xavier-ish 0.02 scale, matching initialize_weights).
    conv_w = 0.02 * jax.random.normal(kw, (Cout, K), dtype=jnp.float32)
    conv_b = 0.02 * jax.random.normal(kb, (Cout,), dtype=jnp.float32)

    for flatten in (False, True):
        ref = _reference_forward(x, conv_w, conv_b, patch_size, flatten=flatten)

        # Exact-math path (f32 matmul inputs) -- tight tolerance.
        out = patchify_ps_forward(x, conv_w, conv_b, patch_size, flatten=flatten,
                                  compute_dtype=jnp.float32)
        out = jax.block_until_ready(out)
        assert out.shape == ref.shape, (out.shape, ref.shape)
        assert jnp.allclose(out, ref, atol=1e-4, rtol=1e-4), \
            float(jnp.max(jnp.abs(out - ref)))

        # Default bf16-I/O path (f32 accumulation + f32 LN) -- bf16 tolerance.
        out_bf = patchify_ps_forward(x, conv_w, conv_b, patch_size,
                                     flatten=flatten)
        out_bf = jax.block_until_ready(out_bf)
        assert out_bf.shape == ref.shape, (out_bf.shape, ref.shape)
        assert jnp.allclose(out_bf, ref, atol=5e-2, rtol=0.0), \
            float(jnp.max(jnp.abs(out_bf - ref)))

    print("KERNEL_OK")
</pallas_src>

<mosaic_0001>
module attributes {stable_mosaic.version = 11 : i64} {
  func.func @_patchify_kernel(%arg0: i32, %arg1: memref<64x16xf32, #tpu.memory_space<vmem>>, %arg2: memref<16x32xf32, #tpu.memory_space<vmem>>, %arg3: memref<1x32xf32, #tpu.memory_space<vmem>>, %arg4: memref<64x32xf32, #tpu.memory_space<vmem>>) attributes {dimension_semantics = [#tpu.dimension_semantics<parallel>], iteration_bounds = array<i64: 2>, scalar_prefetch = 0 : i64, scratch_operands = 0 : i64, tpu.core_type = #tpu.core_type<tc>, window_params = [{transform_indices = @transform_0, window_bounds = array<i64: 64, 16>}, {pipeline_mode = #tpu.pipeline_mode<synchronous>, transform_indices = @transform_1, window_bounds = array<i64: 16, 32>}, {pipeline_mode = #tpu.pipeline_mode<synchronous>, transform_indices = @transform_2, window_bounds = array<i64: 1, 32>}, {transform_indices = @transform_3, window_bounds = array<i64: 64, 32>}]} {
    %c0 = arith.constant 0 : index
    %c0_0 = arith.constant 0 : index
    %0 = vector.load %arg1[%c0, %c0_0] : memref<64x16xf32, #tpu.memory_space<vmem>>, vector<64x16xf32>
    %c0_1 = arith.constant 0 : index
    %c0_2 = arith.constant 0 : index
    %1 = vector.load %arg2[%c0_1, %c0_2] : memref<16x32xf32, #tpu.memory_space<vmem>>, vector<16x32xf32>
    %cst = arith.constant dense<0.000000e+00> : vector<64x32xf32>
    %2 = tpu.matmul %0, %1, %cst {dimension_numbers = #tpu.dot_dimension_numbers<[1], [0], [0], [1], [0, 0, 1, 1], [], []>} : vector<64x16xf32>, vector<16x32xf32>, vector<64x32xf32> -> vector<64x32xf32>
    %c0_3 = arith.constant 0 : index
    %c0_4 = arith.constant 0 : index
    %3 = vector.load %arg3[%c0_3, %c0_4] : memref<1x32xf32, #tpu.memory_space<vmem>>, vector<1x32xf32>
    %4 = vector.broadcast %3 : vector<1x32xf32> to vector<64x32xf32>
    %5 = arith.addf %2, %4 : vector<64x32xf32>
    %cst_5 = arith.constant dense<0.000000e+00> : vector<64xf32>
    %6 = vector.multi_reduction <add>, %5, %cst_5 [1] : vector<64x32xf32> to vector<64xf32>
    %7 = vector.shape_cast %6 : vector<64xf32> to vector<64x1xf32>
    %cst_6 = arith.constant 3.125000e-02 : f32
    %8 = vector.broadcast %cst_6 : f32 to vector<64x1xf32>
    %9 = arith.mulf %7, %8 : vector<64x1xf32>
    %10 = vector.broadcast %9 : vector<64x1xf32> to vector<64x32xf32>
    %11 = arith.subf %5, %10 : vector<64x32xf32>
    %12 = arith.mulf %11, %11 : vector<64x32xf32>
    %cst_7 = arith.constant dense<0.000000e+00> : vector<64xf32>
    %13 = vector.multi_reduction <add>, %12, %cst_7 [1] : vector<64x32xf32> to vector<64xf32>
    %14 = vector.shape_cast %13 : vector<64xf32> to vector<64x1xf32>
    %cst_8 = arith.constant 3.125000e-02 : f32
    %15 = vector.broadcast %cst_8 : f32 to vector<64x1xf32>
    %16 = arith.mulf %14, %15 : vector<64x1xf32>
    %cst_9 = arith.constant 9.99999997E-7 : f32
    %17 = vector.broadcast %cst_9 : f32 to vector<64x1xf32>
    %18 = arith.addf %16, %17 : vector<64x1xf32>
    %19 = math.rsqrt %18 : vector<64x1xf32>
    %20 = vector.broadcast %19 : vector<64x1xf32> to vector<64x32xf32>
    %21 = arith.mulf %11, %20 : vector<64x32xf32>
    %c0_10 = arith.constant 0 : index
    %c0_11 = arith.constant 0 : index
    %22 = vector.load %arg4[%c0_10, %c0_11] : memref<64x32xf32, #tpu.memory_space<vmem>>, vector<64x32xf32>
    tpu.vector_store %arg4[%c0_10, %c0_11], %21 {strides = array<i32>} : memref<64x32xf32, #tpu.memory_space<vmem>>, vector<64x32xf32>,
    return
  }
  func.func @transform_0(%arg0: i32) -> (i32, i32) {
    %c0_i32 = arith.constant 0 : i32
    %c0_i32_0 = arith.constant 0 : i32
    return %arg0, %c0_i32 : i32, i32
  }
  func.func @transform_1(%arg0: i32) -> (i32, i32) {
    %c0_i32 = arith.constant 0 : i32
    %c0_i32_0 = arith.constant 0 : i32
    %c0_i32_1 = arith.constant 0 : i32
    return %c0_i32, %c0_i32_0 : i32, i32
  }
  func.func @transform_2(%arg0: i32) -> (i32, i32) {
    %c0_i32 = arith.constant 0 : i32
    %c0_i32_0 = arith.constant 0 : i32
    %c0_i32_1 = arith.constant 0 : i32
    return %c0_i32, %c0_i32_0 : i32, i32
  }
  func.func @transform_3(%arg0: i32) -> (i32, i32) {
    %c0_i32 = arith.constant 0 : i32
    %c0_i32_0 = arith.constant 0 : i32
    return %arg0, %c0_i32 : i32, i32
  }
}

module attributes {stable_mosaic.version = 11 : i64} {
  func.func @_patchify_kernel(%arg0: i32, %arg1: memref<64x16xf32, #tpu.memory_space<vmem>>, %arg2: memref<16x32xf32, #tpu.memory_space<vmem>>, %arg3: memref<1x32xf32, #tpu.memory_space<vmem>>, %arg4: memref<64x32xf32, #tpu.memory_space<vmem>>) attributes {dimension_semantics = [#tpu.dimension_semantics<parallel>], iteration_bounds = array<i64: 2>, scalar_prefetch = 0 : i64, scratch_operands = 0 : i64, tpu.core_type = #tpu.core_type<tc>, window_params = [{transform_indices = @transform_0, window_bounds = array<i64: 64, 16>}, {pipeline_mode = #tpu.pipeline_mode<synchronous>, transform_indices = @transform_1, window_bounds = array<i64: 16, 32>}, {pipeline_mode = #tpu.pipeline_mode<synchronous>, transform_indices = @transform_2, window_bounds = array<i64: 1, 32>}, {transform_indices = @transform_3, window_bounds = array<i64: 64, 32>}]} {
    %c0 = arith.constant 0 : index
    %c0_0 = arith.constant 0 : index
    %0 = vector.load %arg1[%c0, %c0_0] : memref<64x16xf32, #tpu.memory_space<vmem>>, vector<64x16xf32>
    %c0_1 = arith.constant 0 : index
    %c0_2 = arith.constant 0 : index
    %1 = vector.load %arg2[%c0_1, %c0_2] : memref<16x32xf32, #tpu.memory_space<vmem>>, vector<16x32xf32>
    %cst = arith.constant dense<0.000000e+00> : vector<64x32xf32>
    %2 = tpu.matmul %0, %1, %cst {dimension_numbers = #tpu.dot_dimension_numbers<[1], [0], [0], [1], [0, 0, 1, 1], [], []>} : vector<64x16xf32>, vector<16x32xf32>, vector<64x32xf32> -> vector<64x32xf32>
    %c0_3 = arith.constant 0 : index
    %c0_4 = arith.constant 0 : index
    %3 = vector.load %arg3[%c0_3, %c0_4] : memref<1x32xf32, #tpu.memory_space<vmem>>, vector<1x32xf32>
    %4 = vector.broadcast %3 : vector<1x32xf32> to vector<64x32xf32>
    %5 = arith.addf %2, %4 : vector<64x32xf32>
    %cst_5 = arith.constant dense<0.000000e+00> : vector<64xf32>
    %6 = vector.multi_reduction <add>, %5, %cst_5 [1] : vector<64x32xf32> to vector<64xf32>
    %7 = vector.shape_cast %6 : vector<64xf32> to vector<64x1xf32>
    %cst_6 = arith.constant 3.125000e-02 : f32
    %8 = vector.broadcast %cst_6 : f32 to vector<64x1xf32>
    %9 = arith.mulf %7, %8 : vector<64x1xf32>
    %10 = vector.broadcast %9 : vector<64x1xf32> to vector<64x32xf32>
    %11 = arith.subf %5, %10 : vector<64x32xf32>
    %12 = arith.mulf %11, %11 : vector<64x32xf32>
    %cst_7 = arith.constant dense<0.000000e+00> : vector<64xf32>
    %13 = vector.multi_reduction <add>, %12, %cst_7 [1] : vector<64x32xf32> to vector<64xf32>
    %14 = vector.shape_cast %13 : vector<64xf32> to vector<64x1xf32>
    %cst_8 = arith.constant 3.125000e-02 : f32
    %15 = vector.broadcast %cst_8 : f32 to vector<64x1xf32>
    %16 = arith.mulf %14, %15 : vector<64x1xf32>
    %cst_9 = arith.constant 9.99999997E-7 : f32
    %17 = vector.broadcast %cst_9 : f32 to vector<64x1xf32>
    %18 = arith.addf %16, %17 : vector<64x1xf32>
    %19 = math.rsqrt %18 : vector<64x1xf32>
    %20 = vector.broadcast %19 : vector<64x1xf32> to vector<64x32xf32>
    %21 = arith.mulf %11, %20 : vector<64x32xf32>
    %c0_10 = arith.constant 0 : index
    %c0_11 = arith.constant 0 : index
    %22 = vector.load %arg4[%c0_10, %c0_11] : memref<64x32xf32, #tpu.memory_space<vmem>>, vector<64x32xf32>
    tpu.vector_store %arg4[%c0_10, %c0_11], %21 {strides = array<i32>} : memref<64x32xf32, #tpu.memory_space<vmem>>, vector<64x32xf32>,
    return
  }
  func.func @transform_0(%arg0: i32) -> (i32, i32) {
    %c0_i32 = arith.constant 0 : i32
    %c0_i32_0 = arith.constant 0 : i32
    return %arg0, %c0_i32 : i32, i32
  }
  func.func @transform_1(%arg0: i32) -> (i32, i32) {
    %c0_i32 = arith.constant 0 : i32
    %c0_i32_0 = arith.constant 0 : i32
    %c0_i32_1 = arith.constant 0 : i32
    return %c0_i32, %c0_i32_0 : i32, i32
  }
  func.func @transform_2(%arg0: i32) -> (i32, i32) {
    %c0_i32 = arith.constant 0 : i32
    %c0_i32_0 = arith.constant 0 : i32
    %c0_i32_1 = arith.constant 0 : i32
    return %c0_i32, %c0_i32_0 : i32, i32
  }
  func.func @transform_3(%arg0: i32) -> (i32, i32) {
    %c0_i32 = arith.constant 0 : i32
    %c0_i32_0 = arith.constant 0 : i32
    return %arg0, %c0_i32 : i32, i32
  }
}

</mosaic_0001>

<bundles_post_ra>
// kernel: tpu_custom_call.1
= control target key start
LH: loop header
LB: loop body
LE: loop exit
PB: predicated region body
PF: predicated region fallthrough
CT: control target
= control target key end

     0   :  { %s594_s12 = smov 0   ;;  %s709_s0 = inlined_call_operand.vmem [shape: f32[128,16], index: 0, kind: input, shape index: {}]   ;;  %s710_s1 = inlined_call_operand.vmem [shape: f32[16,32], index: 1, kind: input, shape index: {}]   ;;  %s711_s2 = inlined_call_operand.vmem [shape: f32[1,32], index: 2, kind: input, shape index: {}]   ;;  %s712_s3 = inlined_call_operand.vmem [shape: f32[128,32], index: 3, kind: output, shape index: {}]  }
   0x1 LB: > { %s490_s13 = sadd.s32 4294967295, %s572_s12   ;;  %p494_p0 = scmp.ge.s32.totalorder %s572_s12, 1  ;;  %s572_s12 = sphi %s594_s12, %s13_s12  }
   0x2   : > { %p138_p1 = scmp.lt.s32.totalorder %s572_s12, 3 }
   0x4   : > { %p139_p2 = pnand %p494_p0, %p138_p1 }
   0x5   : > { %v182_v0 = vld [vmem:[%s710_s1] sm:$0xff] (!%p139_p2)  ;;  %v183_v1 = vld [vmem:[%s710_s1 + $0x8] sm:$0xff] (!%p139_p2)  ;;  %s495_s18 = sshll.u32 (!%p139_p2), %s490_s13, 3  ;;  %vm191_vm0 = vcmask (!%p139_p2), 130048   ;;  %vm321_vm1 = vcmask (!%p139_p2), 261120  }
   0x6   : > { %142 = sbr.rel (%p139_p2) target bundleno = 558 (0x22e), region = 32  ;;  %v536_v2 = vpack.c.bf16 (!%p139_p2), %v183_v1, %v182_v0  ;;  %p163_p3 = scmp.lt.s32.totalorder (!%p139_p2), %s495_s18, 15  ;;  %v499_v11 = vld [vmem:[%s711_s2] ss:$0 sm:$0xff] (!%p139_p2) }
   0x8   : > { %537 = vmatprep.subr.bf16.mxu0 (!%p139_p2), %v536_v2  ;;  %540 = vmatprep.subr.bf16.mxu1 (!%p139_p2), %v536_v2 }
   0x9   : > { %539 = vmatpush3.bf16.msra.mxu0 (!%p139_p2), %v536_v2  ;;  %541 = vmatpush3.bf16.msra.mxu1 (!%p139_p2), %v536_v2 }
   0xd   : > { %s714_s18 = smov (!%p163_p3, %s495_s18), 15 }
   0xe   : > { %s496_s19 = sshll.u32 %s714_s18, 3 }
   0xf   : > { %s166_s22 = scalar_lea.vmem %s709_s0, %s496_s19  ;;  %s680_s27 = scalar_lea.vmem %s712_s3, %s496_s19 }
  0x10   : > { %v174_v3 = vld [vmem:[%s166_s22] sm:$0xff]  ;;  %v175_v5 = vld [vmem:[%s166_s22 + $0x8] sm:$0xff]  ;;  %v176_v7 = vld [vmem:[%s166_s22 + $0x10] sm:$0xff] }
  0x11   : > { %v178_v4 = vld [vmem:[%s166_s22 + $0x20] sm:$0xff]  ;;  %524 = vmatprep.mubr.msk.f32.mxu0 %vm191_vm0, %v174_v3  ;;  %v179_v6 = vld [vmem:[%s166_s22 + $0x28] sm:$0xff]  ;;  %v180_v8 = vld [vmem:[%s166_s22 + $0x30] sm:$0xff] }
  0x12   : > { %530 = vmatprep.mubr.msk.f32.mxu1 %vm191_vm0, %v178_v4  ;;  %525 = vmatmul.mubr.msk.f32.vlgmr.msra.gmra.mrb[0].mxu0 %vm191_vm0, %v175_v5  ;;  %v177_v9 = vld [vmem:[%s166_s22 + $0x18] sm:$0xff] }
  0x13   : > { %531 = vmatmul.mubr.msk.f32.vlgmr.msra.gmra.mrb[0].mxu1 %vm191_vm0, %v179_v6  ;;  %527 = vmatprep.mubr.msk.f32.mxu0 %vm191_vm0, %v176_v7  ;;  %v181_v10 = vld [vmem:[%s166_s22 + $0x38] sm:$0xff] }
  0x14   : > { %533 = vmatprep.mubr.msk.f32.mxu1 %vm191_vm0, %v180_v8 }
  0x16   : > { %528 = vmatmul.mubr.msk.f32.gmra.mrb[2].mxu0 %vm191_vm0, %v177_v9 }
  0x17   : > { %534 = vmatmul.mubr.msk.f32.gmra.mrb[2].mxu1 %vm191_vm0, %v181_v10 }
  0xe5   : > { %v526_v12 = vpop.f32.mrb[0].mxu0 }
  0xe6   : > { %v532_v13 = vpop.f32.mrb[0].mxu1  ;;  %v288_v14 = vadd.f32 %v526_v12, %v499_v11  ;;  %v282_v16 = vpop.f32.mrb[1].mxu0 }
  0xe7   : > { %v308_v15 = vadd.f32 %v532_v13, %v499_v11  ;;  %v302_v17 = vpop.f32.mrb[1].mxu1  ;;  %v283_v18 = vadd.f32 %v499_v11, %v282_v16 }
  0xe8   : > { %v325_v20 = vsel %vm321_vm1, %v288_v14, 0.0  ;;  %v303_v27 = vadd.f32 %v499_v11, %v302_v17 }
  0xe9   : > { %v337_v19 = vsel %vm321_vm1, %v308_v15, 0.0  ;;  %326 = vadd.xlane.f32.xlu0 %v325_v20  ;;  %v529_v21 = vpop.f32.mrb[2].mxu0  ;;  %v322_v29 = vsel %vm321_vm1, %v283_v18, 0.0 }
  0xea   : > { %338 = vadd.xlane.f32.xlu1 %v337_v19  ;;  %v535_v22 = vpop.f32.mrb[2].mxu1  ;;  %v298_v23 = vadd.f32 %v529_v21, %v499_v11  ;;  %v292_v24 = vpop.f32.mrb[3].mxu0  ;;  %v334_v33 = vsel %vm321_vm1, %v303_v27, 0.0 }
  0xeb   : > { %v312_v25 = vpop.f32.mrb[3].mxu1  ;;  %v293_v26 = vadd.f32 %v499_v11, %v292_v24  ;;  %v318_v30 = vadd.f32 %v535_v22, %v499_v11 }
  0xec   : > { %v331_v28 = vsel %vm321_vm1, %v298_v23, 0.0  ;;  %v313_v31 = vadd.f32 %v499_v11, %v312_v25 }
  0xed   : > { %323 = vadd.xlane.f32.xlu0 %v322_v29  ;;  %v328_v32 = vsel %vm321_vm1, %v293_v26, 0.0  ;;  %v343_v34 = vsel %vm321_vm1, %v318_v30, 0.0 }
  0xee   : > { %332 = vadd.xlane.f32.xlu1 %v331_v28  ;;  %v340_v35 = vsel %vm321_vm1, %v313_v31, 0.0 }
  0xf1   : > { %335 = vadd.xlane.f32.xlu0 %v334_v33 }
  0xf2   : > { %329 = vadd.xlane.f32.xlu1 %v328_v32 }
  0xf5   : > { %341 = vadd.xlane.f32.xlu0 %v340_v35 }
  0xf6   : > { %344 = vadd.xlane.f32.xlu1 %v343_v34 }
 0x176   : > { %v327_v37 = vpop.xlane.xlu0 %326 }
 0x177   : > { %v339_v36 = vpop.xlane.xlu1 %338  ;;  %v347_v39 = vmul.f32 0.03125, %v327_v37 }
 0x178   : > { %v351_v38 = vmul.f32 0.03125, %v339_v36 }
 0x179   : > { %v637_v41 = vsub.f32 %v288_v14, %v347_v39 }
 0x17a   : > { %v635_v40 = vsub.f32 %v308_v15, %v351_v38  ;;  %v324_v43 = vpop.xlane.xlu0 %323 }
 0x17b   : > { %v333_v42 = vpop.xlane.xlu1 %332  ;;  %v346_v45 = vmul.f32 0.03125, %v324_v43  ;;  %v363_v46 = vmul.f32 %v637_v41, %v637_v41 }
 0x17c   : > { %v349_v44 = vmul.f32 0.03125, %v333_v42  ;;  %v367_v50 = vmul.f32 %v635_v40, %v635_v40 }
 0x17d   : > { %v643_v48 = vsub.f32 %v283_v18, %v346_v45  ;;  %v373_v49 = vsel %vm321_vm1, %v363_v46, 0.0 }
 0x17e   : > { %v641_v47 = vsub.f32 %v298_v23, %v349_v44  ;;  %374 = vadd.xlane.f32.xlu1 %v373_v49  ;;  %v336_v52 = vpop.xlane.xlu0 %335  ;;  %v385_v59 = vsel %vm321_vm1, %v367_v50, 0.0 }
 0x17f   : > { %v330_v51 = vpop.xlane.xlu1 %329  ;;  %v350_v54 = vmul.f32 0.03125, %v336_v52  ;;  %v362_v55 = vmul.f32 %v643_v48, %v643_v48 }
 0x180   : > { %v348_v53 = vmul.f32 0.03125, %v330_v51  ;;  %v365_v56 = vmul.f32 %v641_v47, %v641_v47 }
 0x181   : > { %v654_v58 = vsub.f32 %v303_v27, %v350_v54  ;;  %v370_v60 = vsel %vm321_vm1, %v362_v55, 0.0 }
 0x182   : > { %v652_v57 = vsub.f32 %v293_v26, %v348_v53  ;;  %386 = vadd.xlane.f32.xlu1 %v385_v59  ;;  %371 = vadd.xlane.f32.xlu0 %v370_v60  ;;  %v342_v62 = vpop.xlane.xlu0 %341  ;;  %v379_v2 = vsel %vm321_vm1, %v365_v56, 0.0 }
 0x183   : > { %v345_v61 = vpop.xlane.xlu1 %344  ;;  %v352_v0 = vmul.f32 0.03125, %v342_v62  ;;  %v366_v1 = vmul.f32 %v654_v58, %v654_v58 }
 0x184   : > { %v353_v63 = vmul.f32 0.03125, %v345_v61  ;;  %v364_v6 = vmul.f32 %v652_v57, %v652_v57 }
 0x185   : > { %v663_v4 = vsub.f32 %v313_v31, %v352_v0  ;;  %v382_v5 = vsel %vm321_vm1, %v366_v1, 0.0 }
 0x186   : > { %v661_v3 = vsub.f32 %v318_v30, %v353_v63  ;;  %380 = vadd.xlane.f32.xlu1 %v379_v2  ;;  %383 = vadd.xlane.f32.xlu0 %v382_v5  ;;  %v376_v9 = vsel %vm321_vm1, %v364_v6, 0.0 }
 0x187   : > { %v368_v10 = vmul.f32 %v663_v4, %v663_v4 }
 0x188   : > { %v369_v7 = vmul.f32 %v661_v3, %v661_v3 }
 0x189   : > { %v388_v11 = vsel %vm321_vm1, %v368_v10, 0.0 }
 0x18a   : > { %v391_v8 = vsel %vm321_vm1, %v369_v7, 0.0  ;;  %377 = vadd.xlane.f32.xlu0 %v376_v9 }
 0x18b   : > { %392 = vadd.xlane.f32.xlu1 %v391_v8 }
 0x18e   : > { %389 = vadd.xlane.f32.xlu0 %v388_v11 }
 0x20b   : > { %v375_v12 = vpop.xlane.xlu1 %374 }
 0x20c   : > { %v395_v13 = vmul.f32 0.03125, %v375_v12 }
 0x20e   : > { %v403_v14 = vadd.f32 1e-06, %v395_v13 }
 0x20f   : > { %v387_v15 = vpop.xlane.xlu1 %386  ;;  %v372_v16 = vpop.xlane.xlu0 %371 }
 0x210   : > { %550 = vrsqrt.f32 %v403_v14  ;;  %v399_v17 = vmul.f32 0.03125, %v387_v15  ;;  %v394_v18 = vmul.f32 0.03125, %v372_v16 }
 0x212   : > { %v407_v19 = vadd.f32 1e-06, %v399_v17  ;;  %v402_v20 = vadd.f32 1e-06, %v394_v18 }
 0x213   : > { %v381_v21 = vpop.xlane.xlu1 %380  ;;  %v384_v22 = vpop.xlane.xlu0 %383 }
 0x214   : > { %552 = vrsqrt.f32 %v407_v19  ;;  %v397_v23 = vmul.f32 0.03125, %v381_v21  ;;  %v398_v24 = vmul.f32 0.03125, %v384_v22 }
 0x215   : > { %554 = vrsqrt.f32 %v402_v20 }
 0x216   : > { %v405_v25 = vadd.f32 1e-06, %v397_v23  ;;  %v406_v26 = vadd.f32 1e-06, %v398_v24 }
 0x217   : > { %v378_v28 = vpop.xlane.xlu0 %377 }
 0x218   : > { %v393_v27 = vpop.xlane.xlu1 %392  ;;  %556 = vrsqrt.f32 %v405_v25  ;;  %v396_v30 = vmul.f32 0.03125, %v378_v28 }
 0x219   : > { %v401_v29 = vmul.f32 0.03125, %v393_v27  ;;  %558 = vrsqrt.f32 %v406_v26 }
 0x21a   : > { %v551_v31 = vpop.eup %550  ;;  %v404_v33 = vadd.f32 1e-06, %v396_v30 }
 0x21b   : > { %v409_v32 = vadd.f32 1e-06, %v401_v29  ;;  %v419_v34 = vmul.f32 %v551_v31, %v637_v41  ;;  %v390_v35 = vpop.xlane.xlu0 %389 }
 0x21c   : > { %v400_v36 = vmul.f32 0.03125, %v390_v35 }
 0x21d   : > { %560 = vrsqrt.f32 %v409_v32  ;;  %427 = vst.msk [vmem:[%s680_s27 + $0x8] sm:$0xff] %vm321_vm1, %v419_v34 }
 0x21e   : > { %562 = vrsqrt.f32 %v404_v33  ;;  %v553_v37 = vpop.eup %552  ;;  %v408_v38 = vadd.f32 1e-06, %v400_v36 }
 0x21f   : > { %v555_v39 = vpop.eup %554  ;;  %v423_v42 = vmul.f32 %v553_v37, %v635_v40 }
 0x220   : > { %v418_v43 = vmul.f32 %v555_v39, %v643_v48  ;;  %564 = vrsqrt.f32 %v408_v38 }
 0x221   : > { %431 = vst.msk [vmem:[%s680_s27 + $0x28] sm:$0xff] %vm321_vm1, %v423_v42 }
 0x222   : > { %v557_v41 = vpop.eup %556  ;;  %426 = vst.msk [vmem:[%s680_s27] sm:$0xff] %vm321_vm1, %v418_v43 }
 0x223   : > { %v559_v44 = vpop.eup %558  ;;  %v421_v45 = vmul.f32 %v557_v41, %v641_v47 }
 0x224   : > { %v422_v46 = vmul.f32 %v559_v44, %v654_v58 }
 0x225   : > { %429 = vst.msk [vmem:[%s680_s27 + $0x18] sm:$0xff] %vm321_vm1, %v421_v45 }
 0x226   : > { %430 = vst.msk [vmem:[%s680_s27 + $0x20] sm:$0xff] %vm321_vm1, %v422_v46 }
 0x227   : > { %v561_v49 = vpop.eup %560 }
 0x228   : > { %v563_v40 = vpop.eup %562  ;;  %v425_v48 = vmul.f32 %v561_v49, %v661_v3 }
 0x229   : > { %v420_v50 = vmul.f32 %v563_v40, %v652_v57 }
 0x22a   : > { %433 = vst.msk [vmem:[%s680_s27 + $0x38] sm:$0xff] %vm321_vm1, %v425_v48  ;;  %v565_v51 = vpop.eup %564 }
 0x22b   : > { %428 = vst.msk [vmem:[%s680_s27 + $0x10] sm:$0xff] %vm321_vm1, %v420_v50  ;;  %v424_v52 = vmul.f32 %v565_v51, %v663_v4 }
 0x22d   : > { %432 = vst.msk [vmem:[%s680_s27 + $0x30] sm:$0xff] %vm321_vm1, %v424_v52 }
 0x22e PF: > { %s13_s12 = sadd.s32 1, %s572_s12  }
 0x22f   : > { %p10_p4 = scmp.ge.s32.totalorder %s13_s12, 4  }
 0x231   :  { %12 = sbr.rel (!%p10_p4) target bundleno = 1 (0x1), region = 62 }

// kernel: tpu_custom_call.1
= control target key start
LH: loop header
LB: loop body
LE: loop exit
PB: predicated region body
PF: predicated region fallthrough
CT: control target
= control target key end

     0   :  { %s594_s12 = smov 0   ;;  %s709_s0 = inlined_call_operand.vmem [shape: f32[128,16], index: 0, kind: input, shape index: {}]   ;;  %s710_s1 = inlined_call_operand.vmem [shape: f32[16,32], index: 1, kind: input, shape index: {}]   ;;  %s711_s2 = inlined_call_operand.vmem [shape: f32[1,32], index: 2, kind: input, shape index: {}]   ;;  %s712_s3 = inlined_call_operand.vmem [shape: f32[128,32], index: 3, kind: output, shape index: {}]  }
   0x1 LB: > { %s490_s13 = sadd.s32 4294967295, %s572_s12   ;;  %p494_p0 = scmp.ge.s32.totalorder %s572_s12, 1  ;;  %s572_s12 = sphi %s594_s12, %s13_s12  }
   0x2   : > { %p138_p1 = scmp.lt.s32.totalorder %s572_s12, 3 }
   0x4   : > { %p139_p2 = pnand %p494_p0, %p138_p1 }
   0x5   : > { %v182_v0 = vld [vmem:[%s710_s1] sm:$0xff] (!%p139_p2)  ;;  %v183_v1 = vld [vmem:[%s710_s1 + $0x8] sm:$0xff] (!%p139_p2)  ;;  %s495_s18 = sshll.u32 (!%p139_p2), %s490_s13, 3  ;;  %vm191_vm0 = vcmask (!%p139_p2), 130048   ;;  %vm321_vm1 = vcmask (!%p139_p2), 261120  }
   0x6   : > { %142 = sbr.rel (%p139_p2) target bundleno = 558 (0x22e), region = 32  ;;  %v536_v2 = vpack.c.bf16 (!%p139_p2), %v183_v1, %v182_v0  ;;  %p163_p3 = scmp.lt.s32.totalorder (!%p139_p2), %s495_s18, 15  ;;  %v499_v11 = vld [vmem:[%s711_s2] ss:$0 sm:$0xff] (!%p139_p2) }
   0x8   : > { %537 = vmatprep.subr.bf16.mxu0 (!%p139_p2), %v536_v2  ;;  %540 = vmatprep.subr.bf16.mxu1 (!%p139_p2), %v536_v2 }
   0x9   : > { %539 = vmatpush3.bf16.msra.mxu0 (!%p139_p2), %v536_v2  ;;  %541 = vmatpush3.bf16.msra.mxu1 (!%p139_p2), %v536_v2 }
   0xd   : > { %s714_s18 = smov (!%p163_p3, %s495_s18), 15 }
   0xe   : > { %s496_s19 = sshll.u32 %s714_s18, 3 }
   0xf   : > { %s166_s22 = scalar_lea.vmem %s709_s0, %s496_s19  ;;  %s680_s27 = scalar_lea.vmem %s712_s3, %s496_s19 }
  0x10   : > { %v174_v3 = vld [vmem:[%s166_s22] sm:$0xff]  ;;  %v175_v5 = vld [vmem:[%s166_s22 + $0x8] sm:$0xff]  ;;  %v176_v7 = vld [vmem:[%s166_s22 + $0x10] sm:$0xff] }
  0x11   : > { %v178_v4 = vld [vmem:[%s166_s22 + $0x20] sm:$0xff]  ;;  %524 = vmatprep.mubr.msk.f32.mxu0 %vm191_vm0, %v174_v3  ;;  %v179_v6 = vld [vmem:[%s166_s22 + $0x28] sm:$0xff]  ;;  %v180_v8 = vld [vmem:[%s166_s22 + $0x30] sm:$0xff] }
  0x12   : > { %530 = vmatprep.mubr.msk.f32.mxu1 %vm191_vm0, %v178_v4  ;;  %525 = vmatmul.mubr.msk.f32.vlgmr.msra.gmra.mrb[0].mxu0 %vm191_vm0, %v175_v5  ;;  %v177_v9 = vld [vmem:[%s166_s22 + $0x18] sm:$0xff] }
  0x13   : > { %531 = vmatmul.mubr.msk.f32.vlgmr.msra.gmra.mrb[0].mxu1 %vm191_vm0, %v179_v6  ;;  %527 = vmatprep.mubr.msk.f32.mxu0 %vm191_vm0, %v176_v7  ;;  %v181_v10 = vld [vmem:[%s166_s22 + $0x38] sm:$0xff] }
  0x14   : > { %533 = vmatprep.mubr.msk.f32.mxu1 %vm191_vm0, %v180_v8 }
  0x16   : > { %528 = vmatmul.mubr.msk.f32.gmra.mrb[2].mxu0 %vm191_vm0, %v177_v9 }
  0x17   : > { %534 = vmatmul.mubr.msk.f32.gmra.mrb[2].mxu1 %vm191_vm0, %v181_v10 }
  0xe5   : > { %v526_v12 = vpop.f32.mrb[0].mxu0 }
  0xe6   : > { %v532_v13 = vpop.f32.mrb[0].mxu1  ;;  %v288_v14 = vadd.f32 %v526_v12, %v499_v11  ;;  %v282_v16 = vpop.f32.mrb[1].mxu0 }
  0xe7   : > { %v308_v15 = vadd.f32 %v532_v13, %v499_v11  ;;  %v302_v17 = vpop.f32.mrb[1].mxu1  ;;  %v283_v18 = vadd.f32 %v499_v11, %v282_v16 }
  0xe8   : > { %v325_v20 = vsel %vm321_vm1, %v288_v14, 0.0  ;;  %v303_v27 = vadd.f32 %v499_v11, %v302_v17 }
  0xe9   : > { %v337_v19 = vsel %vm321_vm1, %v308_v15, 0.0  ;;  %326 = vadd.xlane.f32.xlu0 %v325_v20  ;;  %v529_v21 = vpop.f32.mrb[2].mxu0  ;;  %v322_v29 = vsel %vm321_vm1, %v283_v18, 0.0 }
  0xea   : > { %338 = vadd.xlane.f32.xlu1 %v337_v19  ;;  %v535_v22 = vpop.f32.mrb[2].mxu1  ;;  %v298_v23 = vadd.f32 %v529_v21, %v499_v11  ;;  %v292_v24 = vpop.f32.mrb[3].mxu0  ;;  %v334_v33 = vsel %vm321_vm1, %v303_v27, 0.0 }
  0xeb   : > { %v312_v25 = vpop.f32.mrb[3].mxu1  ;;  %v293_v26 = vadd.f32 %v499_v11, %v292_v24  ;;  %v318_v30 = vadd.f32 %v535_v22, %v499_v11 }
  0xec   : > { %v331_v28 = vsel %vm321_vm1, %v298_v23, 0.0  ;;  %v313_v31 = vadd.f32 %v499_v11, %v312_v25 }
  0xed   : > { %323 = vadd.xlane.f32.xlu0 %v322_v29  ;;  %v328_v32 = vsel %vm321_vm1, %v293_v26, 0.0  ;;  %v343_v34 = vsel %vm321_vm1, %v318_v30, 0.0 }
  0xee   : > { %332 = vadd.xlane.f32.xlu1 %v331_v28  ;;  %v340_v35 = vsel %vm321_vm1, %v313_v31, 0.0 }
  0xf1   : > { %335 = vadd.xlane.f32.xlu0 %v334_v33 }
  0xf2   : > { %329 = vadd.xlane.f32.xlu1 %v328_v32 }
  0xf5   : > { %341 = vadd.xlane.f32.xlu0 %v340_v35 }
  0xf6   : > { %344 = vadd.xlane.f32.xlu1 %v343_v34 }
 0x176   : > { %v327_v37 = vpop.xlane.xlu0 %326 }
 0x177   : > { %v339_v36 = vpop.xlane.xlu1 %338  ;;  %v347_v39 = vmul.f32 0.03125, %v327_v37 }
 0x178   : > { %v351_v38 = vmul.f32 0.03125, %v339_v36 }
 0x179   : > { %v637_v41 = vsub.f32 %v288_v14, %v347_v39 }
 0x17a   : > { %v635_v40 = vsub.f32 %v308_v15, %v351_v38  ;;  %v324_v43 = vpop.xlane.xlu0 %323 }
 0x17b   : > { %v333_v42 = vpop.xlane.xlu1 %332  ;;  %v346_v45 = vmul.f32 0.03125, %v324_v43  ;;  %v363_v46 = vmul.f32 %v637_v41, %v637_v41 }
 0x17c   : > { %v349_v44 = vmul.f32 0.03125, %v333_v42  ;;  %v367_v50 = vmul.f32 %v635_v40, %v635_v40 }
 0x17d   : > { %v643_v48 = vsub.f32 %v283_v18, %v346_v45  ;;  %v373_v49 = vsel %vm321_vm1, %v363_v46, 0.0 }
 0x17e   : > { %v641_v47 = vsub.f32 %v298_v23, %v349_v44  ;;  %374 = vadd.xlane.f32.xlu1 %v373_v49  ;;  %v336_v52 = vpop.xlane.xlu0 %335  ;;  %v385_v59 = vsel %vm321_vm1, %v367_v50, 0.0 }
 0x17f   : > { %v330_v51 = vpop.xlane.xlu1 %329  ;;  %v350_v54 = vmul.f32 0.03125, %v336_v52  ;;  %v362_v55 = vmul.f32 %v643_v48, %v643_v48 }
 0x180   : > { %v348_v53 = vmul.f32 0.03125, %v330_v51  ;;  %v365_v56 = vmul.f32 %v641_v47, %v641_v47 }
 0x181   : > { %v654_v58 = vsub.f32 %v303_v27, %v350_v54  ;;  %v370_v60 = vsel %vm321_vm1, %v362_v55, 0.0 }
 0x182   : > { %v652_v57 = vsub.f32 %v293_v26, %v348_v53  ;;  %386 = vadd.xlane.f32.xlu1 %v385_v59  ;;  %371 = vadd.xlane.f32.xlu0 %v370_v60  ;;  %v342_v62 = vpop.xlane.xlu0 %341  ;;  %v379_v2 = vsel %vm321_vm1, %v365_v56, 0.0 }
 0x183   : > { %v345_v61 = vpop.xlane.xlu1 %344  ;;  %v352_v0 = vmul.f32 0.03125, %v342_v62  ;;  %v366_v1 = vmul.f32 %v654_v58, %v654_v58 }
 0x184   : > { %v353_v63 = vmul.f32 0.03125, %v345_v61  ;;  %v364_v6 = vmul.f32 %v652_v57, %v652_v57 }
 0x185   : > { %v663_v4 = vsub.f32 %v313_v31, %v352_v0  ;;  %v382_v5 = vsel %vm321_vm1, %v366_v1, 0.0 }
 0x186   : > { %v661_v3 = vsub.f32 %v318_v30, %v353_v63  ;;  %380 = vadd.xlane.f32.xlu1 %v379_v2  ;;  %383 = vadd.xlane.f32.xlu0 %v382_v5  ;;  %v376_v9 = vsel %vm321_vm1, %v364_v6, 0.0 }
 0x187   : > { %v368_v10 = vmul.f32 %v663_v4, %v663_v4 }
 0x188   : > { %v369_v7 = vmul.f32 %v661_v3, %v661_v3 }
 0x189   : > { %v388_v11 = vsel %vm321_vm1, %v368_v10, 0.0 }
 0x18a   : > { %v391_v8 = vsel %vm321_vm1, %v369_v7, 0.0  ;;  %377 = vadd.xlane.f32.xlu0 %v376_v9 }
 0x18b   : > { %392 = vadd.xlane.f32.xlu1 %v391_v8 }
 0x18e   : > { %389 = vadd.xlane.f32.xlu0 %v388_v11 }
 0x20b   : > { %v375_v12 = vpop.xlane.xlu1 %374 }
 0x20c   : > { %v395_v13 = vmul.f32 0.03125, %v375_v12 }
 0x20e   : > { %v403_v14 = vadd.f32 1e-06, %v395_v13 }
 0x20f   : > { %v387_v15 = vpop.xlane.xlu1 %386  ;;  %v372_v16 = vpop.xlane.xlu0 %371 }
 0x210   : > { %550 = vrsqrt.f32 %v403_v14  ;;  %v399_v17 = vmul.f32 0.03125, %v387_v15  ;;  %v394_v18 = vmul.f32 0.03125, %v372_v16 }
 0x212   : > { %v407_v19 = vadd.f32 1e-06, %v399_v17  ;;  %v402_v20 = vadd.f32 1e-06, %v394_v18 }
 0x213   : > { %v381_v21 = vpop.xlane.xlu1 %380  ;;  %v384_v22 = vpop.xlane.xlu0 %383 }
 0x214   : > { %552 = vrsqrt.f32 %v407_v19  ;;  %v397_v23 = vmul.f32 0.03125, %v381_v21  ;;  %v398_v24 = vmul.f32 0.03125, %v384_v22 }
 0x215   : > { %554 = vrsqrt.f32 %v402_v20 }
 0x216   : > { %v405_v25 = vadd.f32 1e-06, %v397_v23  ;;  %v406_v26 = vadd.f32 1e-06, %v398_v24 }
 0x217   : > { %v378_v28 = vpop.xlane.xlu0 %377 }
 0x218   : > { %v393_v27 = vpop.xlane.xlu1 %392  ;;  %556 = vrsqrt.f32 %v405_v25  ;;  %v396_v30 = vmul.f32 0.03125, %v378_v28 }
 0x219   : > { %v401_v29 = vmul.f32 0.03125, %v393_v27  ;;  %558 = vrsqrt.f32 %v406_v26 }
 0x21a   : > { %v551_v31 = vpop.eup %550  ;;  %v404_v33 = vadd.f32 1e-06, %v396_v30 }
 0x21b   : > { %v409_v32 = vadd.f32 1e-06, %v401_v29  ;;  %v419_v34 = vmul.f32 %v551_v31, %v637_v41  ;;  %v390_v35 = vpop.xlane.xlu0 %389 }
 0x21c   : > { %v400_v36 = vmul.f32 0.03125, %v390_v35 }
 0x21d   : > { %560 = vrsqrt.f32 %v409_v32  ;;  %427 = vst.msk [vmem:[%s680_s27 + $0x8] sm:$0xff] %vm321_vm1, %v419_v34 }
 0x21e   : > { %562 = vrsqrt.f32 %v404_v33  ;;  %v553_v37 = vpop.eup %552  ;;  %v408_v38 = vadd.f32 1e-06, %v400_v36 }
 0x21f   : > { %v555_v39 = vpop.eup %554  ;;  %v423_v42 = vmul.f32 %v553_v37, %v635_v40 }
 0x220   : > { %v418_v43 = vmul.f32 %v555_v39, %v643_v48  ;;  %564 = vrsqrt.f32 %v408_v38 }
 0x221   : > { %431 = vst.msk [vmem:[%s680_s27 + $0x28] sm:$0xff] %vm321_vm1, %v423_v42 }
 0x222   : > { %v557_v41 = vpop.eup %556  ;;  %426 = vst.msk [vmem:[%s680_s27] sm:$0xff] %vm321_vm1, %v418_v43 }
 0x223   : > { %v559_v44 = vpop.eup %558  ;;  %v421_v45 = vmul.f32 %v557_v41, %v641_v47 }
 0x224   : > { %v422_v46 = vmul.f32 %v559_v44, %v654_v58 }
 0x225   : > { %429 = vst.msk [vmem:[%s680_s27 + $0x18] sm:$0xff] %vm321_vm1, %v421_v45 }
 0x226   : > { %430 = vst.msk [vmem:[%s680_s27 + $0x20] sm:$0xff] %vm321_vm1, %v422_v46 }
 0x227   : > { %v561_v49 = vpop.eup %560 }
 0x228   : > { %v563_v40 = vpop.eup %562  ;;  %v425_v48 = vmul.f32 %v561_v49, %v661_v3 }
 0x229   : > { %v420_v50 = vmul.f32 %v563_v40, %v652_v57 }
 0x22a   : > { %433 = vst.msk [vmem:[%s680_s27 + $0x38] sm:$0xff] %vm321_vm1, %v425_v48  ;;  %v565_v51 = vpop.eup %564 }
 0x22b   : > { %428 = vst.msk [vmem:[%s680_s27 + $0x10] sm:$0xff] %vm321_vm1, %v420_v50  ;;  %v424_v52 = vmul.f32 %v565_v51, %v663_v4 }
 0x22d   : > { %432 = vst.msk [vmem:[%s680_s27 + $0x30] sm:$0xff] %vm321_vm1, %v424_v52 }
 0x22e PF: > { %s13_s12 = sadd.s32 1, %s572_s12  }
 0x22f   : > { %p10_p4 = scmp.ge.s32.totalorder %s13_s12, 4  }
 0x231   :  { %12 = sbr.rel (!%p10_p4) target bundleno = 1 (0x1), region = 62 }

</bundles_post_ra>
